<compile_context>
chip_gen: v5e
topology: v5e:2x2
jax: 0.10.0
libtpu: 0.0.40
codegen_flags: <defaults>
</compile_context>

<pallas_src>
import functools
import math

import jax
import jax.numpy as jnp
from jax.experimental import pallas as pl
from jax.experimental.pallas import tpu as pltpu


def _round_up(x: int, m: int) -> int:
    return (x + m - 1) // m * m


# ----------------------------- Pallas kernel --------------------------------
def _tree_embedding_kernel(idx_ref, tab_ref, pe_ref, h_ref, hpos_ref):
    """One (seq-tile, batch) grid step.

    idx_ref  : (1, TILE_S, 2) int32  -- [..., 0] node rows, [..., 1] edge rows
                                        (edge ids already offset into the fused
                                         table's edge-row range on the host)
    tab_ref  : (V_pad, D_pad) f32    -- fused [node; edge] projection table
    pe_ref   : (TILE_S, D_pad) f32   -- sinusoidal positional-encoding tile
    h_ref    : (1, TILE_S, D_pad) f32
    hpos_ref : (1, TILE_S, D_pad) f32
    """
    tile_s = idx_ref.shape[1]
    v_total = tab_ref.shape[0]

    idx = idx_ref[0]                       # (TILE_S, 2)
    v_idx = idx[:, 0:1]                    # (TILE_S, 1) node rows
    e_idx = idx[:, 1:2]                    # (TILE_S, 1) edge rows (pre-offset)

    # Combined one-hot over the fused table rows. Each token selects exactly
    # one node row and one edge row (disjoint row ranges), so a single MXU
    # matmul performs gather + sqrt-scale + linear projection + bias at once.
    # NOTE: out-of-range ids select nothing -> zero contribution (torch
    # nn.Embedding would error instead).
    lane = jax.lax.broadcasted_iota(jnp.int32, (tile_s, v_total), 1)
    onehot = ((lane == v_idx) | (lane == e_idx)).astype(tab_ref.dtype)

    h = jnp.dot(onehot, tab_ref[...], preferred_element_type=jnp.float32)
    h_ref[0] = h.astype(h_ref.dtype)
    hpos_ref[0] = (h + pe_ref[...]).astype(hpos_ref.dtype)


# ------------------------------ JAX wrapper ----------------------------------
def sinusoidal_pe(seq_len: int, d_model: int) -> jnp.ndarray:
    # TODO(synk): PositionalEncoding is not defined in the provided source; the
    # standard transformer sinusoidal PE (x + pe[:seq_len], no dropout) is assumed.
    pos = jnp.arange(seq_len, dtype=jnp.float32)[:, None]
    div = jnp.exp(jnp.arange(0, d_model, 2, dtype=jnp.float32)
                  * (-math.log(10000.0) / d_model))
    pe = jnp.zeros((seq_len, d_model), dtype=jnp.float32)
    pe = pe.at[:, 0::2].set(jnp.sin(pos * div))
    pe = pe.at[:, 1::2].set(jnp.cos(pos * div[: d_model // 2]))
    return pe


class TreeEmbeddingBlockPallas:
    def __init__(self, d_model, node_vocab_size, edge_vocab_size,
                 node_emb_size, edge_emb_size, key, max_seq_tile: int = 512):
        k1, k2, k3, k4 = jax.random.split(key, 4)
        self.d_model = d_model
        self.node_emb_size = node_emb_size
        self.edge_emb_size = edge_emb_size
        self.node_vocab_size = node_vocab_size
        self.edge_vocab_size = edge_vocab_size
        # Tile of the token axis; multiple of 8, sized well under the default
        # scoped-VMEM budget (and v7x's smaller physical VMEM).
        self.max_seq_tile = max_seq_tile

        # nn.Embedding default init: N(0, 1)
        self.node_table = jax.random.normal(
            k1, (node_vocab_size, node_emb_size), dtype=jnp.float32)
        self.edge_table = jax.random.normal(
            k2, (edge_vocab_size, edge_emb_size), dtype=jnp.float32)
        # nn.Linear defaults: weight and bias ~ U(-1/sqrt(in_f), 1/sqrt(in_f))
        in_f = node_emb_size + edge_emb_size
        bound = 1.0 / math.sqrt(in_f)
        self.w = jax.random.uniform(k3, (d_model, in_f), dtype=jnp.float32,
                                    minval=-bound, maxval=bound)
        self.bias = jax.random.uniform(k4, (d_model,), dtype=jnp.float32,
                                       minval=-bound, maxval=bound)

        # ---- host-side pre-fusion: gather + sqrt scale + linear + bias -------
        wv = self.w[:, :node_emb_size]     # (d_model, node_emb)
        we = self.w[:, node_emb_size:]     # (d_model, edge_emb)
        node_fused = (self.node_table * math.sqrt(node_emb_size)) @ wv.T + self.bias
        edge_fused = (self.edge_table * math.sqrt(edge_emb_size)) @ we.T
        fused = jnp.concatenate([node_fused, edge_fused], axis=0)  # (Vn+Ve, d)

        # Pad rows to a sublane multiple, columns to a lane-dense multiple of 128.
        v_total = node_vocab_size + edge_vocab_size
        self.v_pad = _round_up(v_total, 8)
        self.d_pad = _round_up(d_model, 128)
        self.fused_table = jnp.zeros((self.v_pad, self.d_pad), jnp.float32)
        self.fused_table = self.fused_table.at[:v_total, :d_model].set(fused)
        self.edge_offset = node_vocab_size   # edge rows start here in fused table

    def __call__(self, v_list, e_list):
        B, S = v_list.shape
        d_pad = self.d_pad

        tile_s = min(self.max_seq_tile, _round_up(S, 8))
        s_pad = _round_up(S, tile_s)
        n_s_tiles = s_pad // tile_s

        # Pack node/edge ids into one (B, S_pad, 2) int32 array (single input
        # DMA). Edge ids are pre-shifted into the fused table's edge-row range.
        idx = jnp.stack([v_list.astype(jnp.int32),
                         e_list.astype(jnp.int32) + self.edge_offset], axis=-1)
        if s_pad != S:
            idx = jnp.pad(idx, ((0, 0), (0, s_pad - S), (0, 0)))

        pe = sinusoidal_pe(s_pad, self.d_model)                    # (S_pad, d)
        if d_pad != self.d_model:
            pe = jnp.pad(pe, ((0, 0), (0, d_pad - self.d_model)))  # (S_pad, d_pad)

        flops = 2 * B * s_pad * self.v_pad * d_pad
        bytes_accessed = (idx.size * 4 + self.fused_table.size * 4 + pe.size * 4
                          + 2 * B * s_pad * d_pad * 4)

        h, h_pos = pl.pallas_call(
            _tree_embedding_kernel,
            # Grid: (seq-tile, batch). Seq-tile is OUTER so the pe block index
            # is constant across the inner batch sweep (fetched once per seq
            # tile); the table block index never changes (fetched once).
            grid=(n_s_tiles, B),
            in_specs=[
                pl.BlockSpec((1, tile_s, 2), lambda s, b: (b, s, 0)),        # ids
                pl.BlockSpec((self.v_pad, d_pad), lambda s, b: (0, 0)),      # table
                pl.BlockSpec((tile_s, d_pad), lambda s, b: (s, 0)),          # pe
            ],
            out_specs=(
                pl.BlockSpec((1, tile_s, d_pad), lambda s, b: (b, s, 0)),    # h
                pl.BlockSpec((1, tile_s, d_pad), lambda s, b: (b, s, 0)),    # h+pe
            ),
            out_shape=(
                jax.ShapeDtypeStruct((B, s_pad, d_pad), jnp.float32),
                jax.ShapeDtypeStruct((B, s_pad, d_pad), jnp.float32),
            ),
            compiler_params=pltpu.CompilerParams(
                dimension_semantics=("parallel", "parallel")),
            cost_estimate=pl.CostEstimate(
                flops=flops, transcendentals=0, bytes_accessed=bytes_accessed),
        )(idx, self.fused_table, pe)

        # Slice off lane padding / seq padding in the wrapper (layout plumbing).
        return (h[:, :S, :self.d_model], h_pos[:, :S, :self.d_model])

    # pure-JAX reference (un-fused, follows the PyTorch module op-for-op)
    def reference(self, v_list, e_list):
        v_emb = self.node_table[v_list] * math.sqrt(self.node_emb_size)
        e_emb = self.edge_table[e_list] * math.sqrt(self.edge_emb_size)
        cat = jnp.concatenate([v_emb, e_emb], axis=-1)
        h = jnp.einsum('bsf,df->bsd', cat, self.w) + self.bias
        pe = sinusoidal_pe(v_list.shape[1], self.d_model)
        return h, h + pe[None, :, :]


# --------------------------------- main ---------------------------------------
if __name__ == "__main__":
    key = jax.random.PRNGKey(0)
    k_params, k_v, k_e = jax.random.split(key, 3)

    # small shapes: batch=2, seq=8
    B, S = 2, 8
    d_model = 32
    node_vocab_size, edge_vocab_size = 32, 16
    node_emb_size, edge_emb_size = 16, 16

    block = TreeEmbeddingBlockPallas(d_model, node_vocab_size, edge_vocab_size,
                                     node_emb_size, edge_emb_size, k_params)

    v_list = jax.random.randint(k_v, (B, S), 0, node_vocab_size, dtype=jnp.int32)
    e_list = jax.random.randint(k_e, (B, S), 0, edge_vocab_size, dtype=jnp.int32)

    h_emb, h_pos_emb = block(v_list, e_list)
    jax.block_until_ready((h_emb, h_pos_emb))

    h_ref, h_pos_ref = block.reference(v_list, e_list)
    assert h_emb.shape == (B, S, d_model) and h_pos_emb.shape == (B, S, d_model)
    assert jnp.allclose(h_emb, h_ref, atol=1e-3, rtol=1e-3)
    assert jnp.allclose(h_pos_emb, h_pos_ref, atol=1e-3, rtol=1e-3)

    print("KERNEL_OK")
</pallas_src>

<mosaic_0001>
module attributes {stable_mosaic.version = 11 : i64} {
  func.func @_tree_embedding_kernel(%arg0: i32, %arg1: i32, %arg2: memref<1x8x2xi32, #tpu.memory_space<vmem>>, %arg3: memref<48x128xf32, #tpu.memory_space<vmem>>, %arg4: memref<8x128xf32, #tpu.memory_space<vmem>>, %arg5: memref<1x8x128xf32, #tpu.memory_space<vmem>>, %arg6: memref<1x8x128xf32, #tpu.memory_space<vmem>>) attributes {dimension_semantics = [#tpu.dimension_semantics<parallel>, #tpu.dimension_semantics<parallel>], iteration_bounds = array<i64: 1, 2>, scalar_prefetch = 0 : i64, scratch_operands = 0 : i64, tpu.core_type = #tpu.core_type<tc>, window_params = [{transform_indices = @transform_0, window_bounds = array<i64: 1, 8, 2>}, {pipeline_mode = #tpu.pipeline_mode<synchronous>, transform_indices = @transform_1, window_bounds = array<i64: 48, 128>}, {transform_indices = @transform_2, window_bounds = array<i64: 8, 128>}, {transform_indices = @transform_3, window_bounds = array<i64: 1, 8, 128>}, {transform_indices = @transform_4, window_bounds = array<i64: 1, 8, 128>}]} {
    %c0 = arith.constant 0 : index
    %c0_0 = arith.constant 0 : index
    %c0_1 = arith.constant 0 : index
    %0 = vector.load %arg2[%c0, %c0_0, %c0_1] : memref<1x8x2xi32, #tpu.memory_space<vmem>>, vector<1x8x2xi32>
    %1 = vector.shape_cast %0 : vector<1x8x2xi32> to vector<8x2xi32>
    %2 = vector.extract_strided_slice %1 {offsets = [0, 0], sizes = [8, 1], strides = [1, 1]} : vector<8x2xi32> to vector<8x1xi32>
    %3 = vector.extract_strided_slice %1 {offsets = [0, 1], sizes = [8, 1], strides = [1, 1]} : vector<8x2xi32> to vector<8x1xi32>
    %4 = tpu.iota {dimensions = array<i32: 1>} : vector<8x48xi32>
    %5 = vector.broadcast %2 : vector<8x1xi32> to vector<8x48xi32>
    %6 = arith.cmpi eq, %4, %5 : vector<8x48xi32>
    %7 = vector.broadcast %3 : vector<8x1xi32> to vector<8x48xi32>
    %8 = arith.cmpi eq, %4, %7 : vector<8x48xi32>
    %9 = arith.ori %6, %8 : vector<8x48xi1>
    %10 = arith.extui %9 : vector<8x48xi1> to vector<8x48xi32>
    %11 = arith.sitofp %10 : vector<8x48xi32> to vector<8x48xf32>
    %c0_2 = arith.constant 0 : index
    %c0_3 = arith.constant 0 : index
    %12 = vector.load %arg3[%c0_2, %c0_3] : memref<48x128xf32, #tpu.memory_space<vmem>>, vector<48x128xf32>
    %cst = arith.constant dense<0.000000e+00> : vector<8x128xf32>
    %13 = tpu.matmul %11, %12, %cst {dimension_numbers = #tpu.dot_dimension_numbers<[1], [0], [0], [1], [0, 0, 1, 1], [], []>} : vector<8x48xf32>, vector<48x128xf32>, vector<8x128xf32> -> vector<8x128xf32>
    %c0_4 = arith.constant 0 : index
    %c0_5 = arith.constant 0 : index
    %c0_6 = arith.constant 0 : index
    %14 = vector.load %arg5[%c0_4, %c0_5, %c0_6] : memref<1x8x128xf32, #tpu.memory_space<vmem>>, vector<1x8x128xf32>
    %15 = vector.shape_cast %14 : vector<1x8x128xf32> to vector<8x128xf32>
    %16 = vector.shape_cast %13 : vector<8x128xf32> to vector<1x8x128xf32>
    tpu.vector_store %arg5[%c0_4, %c0_5, %c0_6], %16 {strides = array<i32>} : memref<1x8x128xf32, #tpu.memory_space<vmem>>, vector<1x8x128xf32>,
    %c0_7 = arith.constant 0 : index
    %c0_8 = arith.constant 0 : index
    %17 = vector.load %arg4[%c0_7, %c0_8] : memref<8x128xf32, #tpu.memory_space<vmem>>, vector<8x128xf32>
    %18 = arith.addf %13, %17 : vector<8x128xf32>
    %c0_9 = arith.constant 0 : index
    %c0_10 = arith.constant 0 : index
    %c0_11 = arith.constant 0 : index
    %19 = vector.load %arg6[%c0_9, %c0_10, %c0_11] : memref<1x8x128xf32, #tpu.memory_space<vmem>>, vector<1x8x128xf32>
    %20 = vector.shape_cast %19 : vector<1x8x128xf32> to vector<8x128xf32>
    %21 = vector.shape_cast %18 : vector<8x128xf32> to vector<1x8x128xf32>
    tpu.vector_store %arg6[%c0_9, %c0_10, %c0_11], %21 {strides = array<i32>} : memref<1x8x128xf32, #tpu.memory_space<vmem>>, vector<1x8x128xf32>,
    return
  }
  func.func @transform_0(%arg0: i32, %arg1: i32) -> (i32, i32, i32) {
    %c0_i32 = arith.constant 0 : i32
    %c0_i32_0 = arith.constant 0 : i32
    return %arg1, %arg0, %c0_i32 : i32, i32, i32
  }
  func.func @transform_1(%arg0: i32, %arg1: i32) -> (i32, i32) {
    %c0_i32 = arith.constant 0 : i32
    %c0_i32_0 = arith.constant 0 : i32
    %c0_i32_1 = arith.constant 0 : i32
    return %c0_i32, %c0_i32_0 : i32, i32
  }
  func.func @transform_2(%arg0: i32, %arg1: i32) -> (i32, i32) {
    %c0_i32 = arith.constant 0 : i32
    %c0_i32_0 = arith.constant 0 : i32
    return %arg0, %c0_i32 : i32, i32
  }
  func.func @transform_3(%arg0: i32, %arg1: i32) -> (i32, i32, i32) {
    %c0_i32 = arith.constant 0 : i32
    %c0_i32_0 = arith.constant 0 : i32
    return %arg1, %arg0, %c0_i32 : i32, i32, i32
  }
  func.func @transform_4(%arg0: i32, %arg1: i32) -> (i32, i32, i32) {
    %c0_i32 = arith.constant 0 : i32
    %c0_i32_0 = arith.constant 0 : i32
    return %arg1, %arg0, %c0_i32 : i32, i32, i32
  }
}

</mosaic_0001>

<bundles_post_ra>
// kernel: tpu_custom_call.1
= control target key start
LH: loop header
LB: loop body
LE: loop exit
PB: predicated region body
PF: predicated region fallthrough
CT: control target
= control target key end

     0   :  { %10 = vsyncpa [#allocation3], 0  ;;  %s884_s0 = inlined_call_operand.vmem [shape: s32[2,8,2], index: 0, kind: input, shape index: {}]   ;;  %s885_s1 = inlined_call_operand.hbm [shape: f32[48,128], index: 1, kind: input, shape index: {}]   ;;  %s886_s2 = inlined_call_operand.vmem [shape: f32[8,128], index: 2, kind: input, shape index: {}]   ;;  %s887_s3 = inlined_call_operand.hbm [shape: f32[2,8,128], index: 3, kind: output, shape index: {0}]   ;;  %s888_s4 = inlined_call_operand.hbm [shape: f32[2,8,128], index: 4, kind: output, shape index: {1}]  }
   0x1   :  { %11 = vsyncpa [#allocation4], 0 }
   0x2   :  { %13 = vsyncpa [#allocation4 + $0x1], 0 }
   0x3   :  { %14 = vsyncpa [#allocation7], 0 }
   0x4   :  { %16 = vsyncpa [#allocation7 + $0x1], 0  ;;  %s756_s15 = smov 0   ;;  %s758_s16 = smov 0  }
   0x5   :  { %s760_s17 = smov 0   ;;  %s762_s18 = smov 0  }
   0x6   :  { %s764_s19 = smov 0   ;;  %s766_s20 = smov 0  }
   0x7 LB: > { %s482_s21 = sadd.s32 4294967295, %s723_s20   ;;  %s483_s22 = sadd.s32 4294967294, %s723_s20   ;;  %s723_s20 = sphi %s766_s20, %s22_s20   ;;  %s719_s19 = sphi %s764_s19, %s895_s19   ;;  %s715_s18 = sphi %s762_s18, %s894_s18   ;;  %s711_s17 = sphi %s760_s17, %s893_s17   ;;  %s707_s16 = sphi %s758_s16, %s892_s16   ;;  %s703_s15 = sphi %s756_s15, %s891_s15  }
   0x8   : > { %s31_s23 = sadd.s32 1, %s719_s19  ;;  %s118_s24 = sadd.s32 1, %s711_s17 }
   0x9   : > { %p32_p0 = scmp.ge.s32.totalorder %s31_s23, 2  ;;  %p128_p1 = scmp.ne.s32.totalorder %s711_s17, %s707_s16 }
   0xa   : > { %p129_p2 = scmp.eq.s32.totalorder %s482_s21, 1  ;;  %p134_p3 = scmp.ne.s32.totalorder %s707_s16, %s703_s15 }
   0xb   : > { %s897_s23 = smov (%p32_p0, %s31_s23), 0  ;;  %p135_p5 = scmp.eq.s32.totalorder %s483_s22, 1 }
   0xc   : > { %p796_p4 = por %p129_p2, %p128_p1  ;;  %s113_s26 = ssub.s32 %s719_s19, %s897_s23 }
   0xd   : > { %p484_p6 = scmp.ge.s32.totalorder %s723_s20, 1  ;;  %p116_p7 = scmp.eq.s32.totalorder %s113_s26, 0 }
   0xe   : > { %p803_p8 = por %p135_p5, %p134_p3  ;;  %p170_p9 = scmp.lt.s32.totalorder %s723_s20, 3 }
   0xf   : > { %s809_s28 = scalar_select %p116_p7, %s711_s17, %s118_s24  }
  0x10   : > { %p171_p10 = pnand %p484_p6, %p170_p9  ;;  %p520_p11 = scmp.eq.s32.totalorder %s482_s21, 0 }
  0x11   : > { %s181_s5 = sshll.u32 %s885_s1, 4  ;;  %s725_s6 = smov [#allocation2]   ;;  %s182_s5 = int_to_ptr.hbm [resolvable:$true] %s181_s5 }
  0x12   : > { %p509_p12 = pneg %p171_p10  ;;  %s183_s7 = sshll.u32 %s725_s6, 4  ;;  %s184_s7 = int_to_ptr.vmem [resolvable:$true] %s183_s7 }
  0x13   : > { %s726_s8 = smov 128   ;;  %s727_s9 = smov 8  }
  0x14   : > { %p510_p13 = pnand %p520_p11, %p509_p12  ;;  %216 = sbr.rel (%p171_p10) target bundleno = 301 (0x12d), region = 32 }
  0x16   : > { %512 = dma.hbm_to_vmem [thread:$0]  (!%p510_p13), %s182_s5, 768, %s184_s7, [#allocation3], %s726_s8, %s726_s8, %s727_s9  }
  0x19   : > { %690 = dma.done.wait (%p520_p11), [#allocation3], 768  }
  0x1a   : > { %692 = vsyncadd (%p520_p11), [#allocation3], 4294966528  ;;  %p254_p0 = scmp.lt.s32.totalorder %s715_s18, 1  ;;  %v728_v0 = vmov 0   ;;  %v729_v2 = vmov 1   ;;  %v284_v3 = vld [vmem:[#allocation2 + $0x28] sm:$0xff]  ;;  %v266_v10 = vlaneseq }
  0x1b   : > { %577 = vset.pattern.permute.xlu0 %v728_v0  ;;  %v283_v4 = vld [vmem:[#allocation2 + $0x20] sm:$0xff]  ;;  %299 = vmatpush.msra.mxu0 %v284_v3  ;;  %v282_v5 = vld [vmem:[#allocation2 + $0x18] sm:$0xff]  ;;  %v281_v6 = vld [vmem:[#allocation2 + $0x10] sm:$0xff]  ;;  %vm285_vm2 = vcmask 392192   ;;  %v730_v13 = vmov 0.0   ;;  %s820_s21 = sand.u32 1, %s707_s16  }
  0x1c   : > { %s255_s10 = scalar_select %p254_p0, %s715_s18, 1  ;;  %v280_v7 = vld [vmem:[#allocation2 + $0x8] sm:$0xff]  ;;  %v279_v8 = vld [vmem:[#allocation2] sm:$0xff]  ;;  %v267_v11 = vand.u32 127, %v266_v10 }
  0x1d   : > { %300 = vmatpush.msra.mxu0 %v283_v4  ;;  %s490_s22 = sshll.u32 %s820_s21, 3  ;;  %s497_s24 = sshll.u32 %s715_s18, 3  ;;  %v310_v15 = vld [vmem:[%s886_s2] sm:$0xff] }
  0x1e   : > { %s492_s11 = sshll.u32 %s255_s10, 3  ;;  %s330_s30 = scalar_lea.hbm %s887_s3, %s497_s24 }
  0x1f   : > { %s260_s14 = scalar_lea.vmem %s884_s0, %s492_s11  ;;  %301 = vmatpush.msra.mxu0 %v282_v5  ;;  %s246_s5 = scalar_lea.vmem [#allocation5], %s490_s22 }
  0x20   : > { %v265_v1 = vld [vmem:[%s260_s14] sm:$0xff]  ;;  %s332_s6 = sshll.u32 %s246_s5, 4  ;;  %s345_s9 = scalar_lea.hbm %s888_s4, %s497_s24  ;;  %s333_s6 = int_to_ptr.vmem [resolvable:$true] %s332_s6 }
  0x21   : > { %269 = vperm.xlu0 %577, %v265_v1   ;;  %302 = vmatpush.msra.mxu0 %v281_v6  ;;  %s334_s10 = sshll.u32 %s330_s30, 4  ;;  %s253_s13 = scalar_lea.vmem [#allocation6], %s490_s22  ;;  %s335_s10 = int_to_ptr.hbm [resolvable:$true] %s334_s10 }
  0x22   : > { %s347_s18 = sshll.u32 %s253_s13, 4  ;;  %s349_s14 = sshll.u32 %s345_s9, 4  ;;  %s833_s18 = int_to_ptr.vmem [resolvable:$true] %s347_s18  ;;  %s835_s14 = int_to_ptr.hbm [resolvable:$true] %s349_s14 }
  0x23   : > { %303 = vmatpush.msra.mxu0 %v280_v7  ;;  %s314_s26 = scalar_lea.sflag [#allocation4], %s820_s21  ;;  %s623_s24 = sshra.s32 %s335_s10, 4  ;;  %s624_s24 = int_to_ptr.hbm [resolvable:$true] %s623_s24 }
  0x24   : > { %s625_s29 = scalar_lea.hbm %s624_s24, 8  ;;  %s629_s7 = scalar_lea.hbm %s887_s3, 16 }
  0x25   : > { %304 = vmatpush.msra.mxu0 %v279_v8  ;;  %p626_p1 = scmp.ne.s32.totalorder %s624_s24, %s625_s29  ;;  %p630_p5 = scmp.lt.s32.totalorder %s624_s24, %s887_s3 }
  0x26   : > { %p631_p6 = scmp.lt.s32.totalorder %s629_s7, %s625_s29 }
  0x27   : > { %p627_p2 = pnand %p626_p1, %p796_p4 }
  0x28   : > { %p632_p7 = por %p631_p6, %p630_p5 }
  0x29   : > { %578 = vset.pattern.permute.xlu0 %v729_v2  ;;  %p628_p3 = pneg %p627_p2 }
  0x2a   : > { %273 = vperm.xlu0 %578, %v265_v1  }
  0x2b   : > { %p633_p9 = pnand %p632_p7, %p628_p3 }
  0x93   : > { %v270_v9 = vpop.permute.xlu0 %269 }
  0x94   : > { %vm271_vm0 = vcmp.eq.s32.totalorder %v267_v11, %v270_v9 }
  0x9c   : > { %v274_v12 = vpop.permute.xlu0 %273 }
  0x9d   : > { %vm275_vm1 = vcmp.eq.s32.totalorder %v267_v11, %v274_v12 }
  0x9e   : > { %vm276_vm3 = vmor %vm271_vm0, %vm275_vm1 }
  0x9f   : > { %v493_v14 = vsel %vm276_vm3, 1.0, %v730_v13 }
  0xa0   : > { %494 = vmatmul.msk.f32.vlgmr.msra.gmra.mxu0 %vm285_vm2, %v493_v14 }
 0x11d   : > { %v306_v16 = vpop.f32.mrf.mxu0 }
 0x11e   : > { %309 = vst [vmem:[%s246_s5] sm:$0xff] %v306_v16  ;;  %v311_v17 = vadd.f32 %v310_v15, %v306_v16 }
 0x11f   : > { %636 = shalt.err (!%p633_p9)
}
 0x120   : > { %505 = dma.vmem_to_hbm [thread:$0]  (%p796_p4), %s333_s6, 128, %s335_s10, %s314_s26   ;;  %312 = vst [vmem:[%s253_s13] sm:$0xff] %v311_v17 }
 0x121   : > { %s319_s5 = scalar_lea.sflag [#allocation7], %s820_s21  ;;  %s651_s11 = sshra.s32 %s835_s14, 4  ;;  %s652_s11 = int_to_ptr.hbm [resolvable:$true] %s651_s11 }
 0x122   : > { %s653_s12 = scalar_lea.hbm %s652_s11, 8  ;;  %s657_s30 = scalar_lea.hbm %s888_s4, 16 }
 0x123   : > { %p654_p10 = scmp.ne.s32.totalorder %s652_s11, %s653_s12  ;;  %p658_p13 = scmp.lt.s32.totalorder %s652_s11, %s888_s4 }
 0x124   : > { %p659_p0 = scmp.lt.s32.totalorder %s657_s30, %s653_s12 }
 0x125   : > { %p655_p11 = pnand %p654_p10, %p796_p4 }
 0x126   : > { %p660_p1 = por %p659_p0, %p658_p13 }
 0x127   : > { %p656_p12 = pneg %p655_p11 }
 0x129   : > { %p661_p2 = pnand %p660_p1, %p656_p12 }
 0x12b   : > { %664 = shalt.err (!%p661_p2)
}
 0x12c   : > { %506 = dma.vmem_to_hbm [thread:$0]  (%p796_p4), %s833_s18, 128, %s835_s14, %s319_s5  }
 0x12d PF: > { %p522_p3 = scmp.ge.s32.totalorder %s723_s20, 2  ;;  %s361_s21 = sand.u32 1, %s703_s15  }
 0x12e   : > { %s362_s6 = scalar_lea.sflag [#allocation4], %s361_s21 }
 0x12f   : > { %p514_p5 = pnand %p522_p3, %p803_p8 }
 0x131   : > { %p515_p6 = pneg %p514_p5 }
 0x133   : > { %694 = dma.done.wait (%p515_p6), %s362_s6, 128  }
 0x134   : > { %696 = vsyncadd (%p515_p6), %s362_s6, 4294967168  ;;  %s372_s10 = scalar_lea.sflag [#allocation7], %s361_s21 }
 0x135   : > { %698 = dma.done.wait (%p515_p6), %s372_s10, 128  }
 0x136   : > { %700 = vsyncadd (%p515_p6), %s372_s10, 4294967168  ;;  %s22_s20 = sadd.s32 1, %s723_s20   ;;  %s891_s15 = smov %s707_s16 }
 0x137   : > { %p19_p7 = scmp.ge.s32.totalorder %s22_s20, 4   ;;  %s892_s16 = smov %s711_s17 }
 0x138   : > { %s893_s17 = smov %s809_s28  ;;  %s894_s18 = smov %s719_s19 }
 0x139   : > { %s895_s19 = smov %s897_s23  ;;  %21 = sbr.rel (!%p19_p7) target bundleno = 7 (0x7), region = 92 }
 0x13e   :  { %378 = vsyncpa [#allocation3], 1 }
 0x13f   :  { %380 = vsyncpa [#allocation3 + $0x1], 1 }
 0x140   :  { %381 = vsyncpa [#allocation4], 1 }
 0x141   :  { %383 = vsyncpa [#allocation4 + $0x1], 1 }
 0x142   :  { %384 = vsyncpa [#allocation7], 1 }
 0x143   :  { %386 = vsyncpa [#allocation7 + $0x1], 1 }

</bundles_post_ra>
